<compile_context>
chip_gen: v5e
topology: v5e:2x2
jax: 0.10.0
libtpu: 0.0.40
codegen_flags: <defaults>
</compile_context>

<pallas_src>
import functools

import jax
import jax.numpy as jnp
from jax.experimental import pallas as pl
from jax.experimental.pallas import tpu as pltpu

_NEG_BIG = -1e30  # bias padding for unused label lanes; exp underflows to 0.


def _round_up(x, m):
    return (x + m - 1) // m * m


def _make_bow_kernel(block_v):
    """Kernel for one (batch-tile i, vocab-tile k) grid step."""

    def kernel(x_ref, w_ref, b_ref, o_ref):
        k = pl.program_id(1)

        @pl.when(k == 0)
        def _init():
            o_ref[...] = jnp.zeros_like(o_ref)

        # Weight operand: either the streamed (Lp, block_v) tile, or a pl.ds
        # slice of the fully VMEM-resident (Lp, Vp) weight (DMA'd only once).
        if w_ref.shape[-1] == block_v:
            w = w_ref[...]
        else:
            start = pl.multiple_of(k * block_v, 128)
            w = w_ref[:, pl.ds(start, block_v)]

        # In-kernel cast of the f32 activation tile to the MXU dtype; the HBM
        # stream was read once, in its native dtype.
        x = x_ref[...].astype(w.dtype)

        # Contract the lane-dense vocab axis of both operands:
        #   (TB, TV) x (Lp, TV) -> (TB, Lp), accumulated in f32 in o_ref.
        o_ref[...] += jax.lax.dot_general(
            x, w,
            dimension_numbers=(((1,), (1,)), ((), ())),
            preferred_element_type=jnp.float32,
        )

        @pl.when(k == pl.num_programs(1) - 1)
        def _finalize():
            logits = o_ref[...] + b_ref[...]               # (TB, Lp) f32
            # Numerically stable log_softmax over label lanes (PyTorch dim=1).
            # Padded lanes carry bias = -1e30 -> exp(shifted) underflows to 0.
            # Keep all finalize math in f32 (safe on v5e: no bf16 VPU/EUP).
            m = jnp.max(logits, axis=-1, keepdims=True)
            shifted = logits - m
            lse = jnp.log(jnp.sum(jnp.exp(shifted), axis=-1, keepdims=True))
            o_ref[...] = shifted - lse

    return kernel


def prepare_bow_params(weight, bias, *, block_v=8192, matmul_dtype=jnp.bfloat16):
    """Pad + cast the Linear parameters once (cache the result across calls).

    weight: (L, V) f32 (PyTorch Linear layout); bias: (L,).
    Returns (w_p, b_p): (Lp, Vp) matmul-dtype weight, (1, Lp) f32 bias.
    Note: the bf16 weight/activation cast introduces ~1e-2 relative error vs a
    pure-f32 reference (fine for a classifier).
    """
    L, V = weight.shape
    assert bias.shape == (L,)
    Lp = _round_up(L, 128)                                  # lane-dense labels
    block_v = _round_up(min(block_v, _round_up(V, 128)), 128)
    Vp = _round_up(V, block_v)

    w_p = weight
    if (Lp, Vp) != (L, V):
        w_p = jnp.pad(weight, ((0, Lp - L), (0, Vp - V)))
    w_p = w_p.astype(matmul_dtype)
    b_p = jnp.pad(bias.astype(jnp.float32), (0, Lp - L),
                  constant_values=_NEG_BIG).reshape(1, Lp)
    return w_p, b_p


@functools.partial(
    jax.jit,
    static_argnames=("num_labels", "block_b", "block_v", "weight_resident"))
def bow_forward_prepared(bow_vec, w_p, b_p, *, num_labels, block_b=256,
                         block_v=8192, weight_resident=None):
    """log_softmax(bow_vec @ W.T + b, axis=1) using prepared/padded params."""
    B, V = bow_vec.shape
    Lp, Vp = w_p.shape
    L = num_labels

    x_itemsize = jnp.dtype(bow_vec.dtype).itemsize
    w_itemsize = jnp.dtype(w_p.dtype).itemsize
    sublane = max(8, 32 // x_itemsize)          # 8 for f32 x, 16 for bf16 x

    # --- vocab tiling: block_v must divide the padded vocab exactly ----------
    block_v = _round_up(min(block_v, Vp), 128)
    if Vp % block_v:
        block_v = Vp                            # fall back to a single k tile
    nk = Vp // block_v

    # --- batch tiling: >= 2 "parallel" tiles when B allows (v7x has 2 TCs) ---
    block_b = _round_up(min(block_b, max(B, 1)), sublane)
    if _round_up(B, block_b) == block_b and B > sublane:
        block_b = _round_up(-(-B // 2), sublane)
    Bp = _round_up(B, block_b)
    nb = Bp // block_b

    # --- pad x with zeros only (no dtype cast here; kernel casts per tile) ---
    x_p = bow_vec
    if (Bp, Vp) != (B, V):
        x_p = jnp.pad(bow_vec, ((0, Bp - B), (0, Vp - V)))

    # --- weight residency: pays off only when both axes are tiled and it fits
    w_bytes = Lp * Vp * w_itemsize
    if weight_resident is None:
        weight_resident = (nb > 1) and (nk > 1) and (2 * w_bytes <= 16 * 1024 * 1024)
    if weight_resident:
        w_spec = pl.BlockSpec((Lp, Vp), lambda i, k: (0, 0))     # DMA'd once
        w_hbm_bytes = w_bytes
    else:
        w_spec = pl.BlockSpec((Lp, block_v), lambda i, k: (0, k))
        w_hbm_bytes = nb * w_bytes

    cost = pl.CostEstimate(
        flops=2 * Bp * Vp * Lp,
        transcendentals=Bp * Lp,
        bytes_accessed=x_itemsize * Bp * Vp + w_hbm_bytes + 4 * (Lp + Bp * Lp),
    )

    out_p = pl.pallas_call(
        _make_bow_kernel(block_v),
        out_shape=jax.ShapeDtypeStruct((Bp, Lp), jnp.float32),
        grid=(nb, nk),
        in_specs=[
            pl.BlockSpec((block_b, block_v), lambda i, k: (i, k)),   # x tile
            w_spec,                                                   # weight
            pl.BlockSpec((1, Lp), lambda i, k: (0, 0)),               # bias
        ],
        out_specs=pl.BlockSpec((block_b, Lp), lambda i, k: (i, 0)),   # lane-dense
        compiler_params=pltpu.CompilerParams(
            dimension_semantics=("parallel", "arbitrary"),
            vmem_limit_bytes=48 * 1024 * 1024,
        ),
        cost_estimate=cost,
    )(x_p, w_p, b_p)

    return out_p[:B, :L]


def bow_forward(bow_vec, weight, bias, *, block_b=256, block_v=8192,
                matmul_dtype=jnp.bfloat16, weight_resident=None):
    """Convenience wrapper: prepares params then runs the kernel.

    For repeated inference, call prepare_bow_params() once and reuse the
    result with bow_forward_prepared() (avoids re-padding/casting the weight).
    """
    w_p, b_p = prepare_bow_params(weight, bias, block_v=block_v,
                                  matmul_dtype=matmul_dtype)
    return bow_forward_prepared(bow_vec, w_p, b_p, num_labels=weight.shape[0],
                                block_b=block_b, block_v=block_v,
                                weight_resident=weight_resident)


def _reference(bow_vec, weight, bias, matmul_dtype=None):
    x, w = bow_vec, weight
    if matmul_dtype is not None:
        x = x.astype(matmul_dtype).astype(jnp.float32)
        w = w.astype(matmul_dtype).astype(jnp.float32)
    return jax.nn.log_softmax(x @ w.T + bias, axis=1)


if __name__ == "__main__":
    # Small shapes consistent with the classic Spanish/English BoW example.
    batch, vocab_size, num_labels = 8, 32, 2

    key = jax.random.PRNGKey(0)
    k_x, k_w, k_b = jax.random.split(key, 3)
    bound = 1.0 / (vocab_size ** 0.5)
    weight = jax.random.uniform(k_w, (num_labels, vocab_size), jnp.float32, -bound, bound)
    bias = jax.random.uniform(k_b, (num_labels,), jnp.float32, -bound, bound)
    bow_vec = jax.random.randint(k_x, (batch, vocab_size), 0, 4).astype(jnp.float32)

    # Weight prep is done once and cached (hoisted out of the per-call path).
    w_p, b_p = prepare_bow_params(weight, bias)
    out = jax.block_until_ready(
        bow_forward_prepared(bow_vec, w_p, b_p, num_labels=num_labels))
    assert out.shape == (batch, num_labels)
    # Exact semantics check against a reference with the same bf16 MXU cast...
    assert jnp.allclose(out, _reference(bow_vec, weight, bias, jnp.bfloat16),
                        atol=1e-4, rtol=1e-4)
    # ...and a sanity check against the pure-f32 PyTorch-equivalent math.
    assert jnp.allclose(out, _reference(bow_vec, weight, bias), atol=3e-2, rtol=3e-2)

    # Multi-tile path: parallel batch tiles + vocab accumulation with a
    # VMEM-resident weight (auto-selected) and small deliberate block sizes.
    k2x, k2w, k2b = jax.random.split(jax.random.PRNGKey(1), 3)
    B2, V2, L2 = 40, 300, 3
    w2 = jax.random.uniform(k2w, (L2, V2), jnp.float32, -0.1, 0.1)
    b2 = jax.random.uniform(k2b, (L2,), jnp.float32, -0.1, 0.1)
    x2 = jax.random.randint(k2x, (B2, V2), 0, 4).astype(jnp.float32)
    out2 = jax.block_until_ready(bow_forward(x2, w2, b2, block_b=16, block_v=128))
    assert out2.shape == (B2, L2)
    assert jnp.allclose(out2, _reference(x2, w2, b2, jnp.bfloat16),
                        atol=5e-4, rtol=5e-4)

    # Same shapes but force the streamed-weight (non-resident) path.
    out3 = jax.block_until_ready(
        bow_forward(x2, w2, b2, block_b=16, block_v=128, weight_resident=False))
    assert jnp.allclose(out3, _reference(x2, w2, b2, jnp.bfloat16),
                        atol=5e-4, rtol=5e-4)

    print("KERNEL_OK")
</pallas_src>

<mosaic_0001>
module attributes {stable_mosaic.version = 11 : i64} {
  func.func @kernel(%arg0: i32, %arg1: i32, %arg2: memref<8x128xf32, #tpu.memory_space<vmem>>, %arg3: memref<128x128xbf16, #tpu.memory_space<vmem>>, %arg4: memref<1x128xf32, #tpu.memory_space<vmem>>, %arg5: memref<8x128xf32, #tpu.memory_space<vmem>>) attributes {dimension_semantics = [#tpu.dimension_semantics<parallel>, #tpu.dimension_semantics<arbitrary>], iteration_bounds = array<i64: 1, 1>, scalar_prefetch = 0 : i64, scratch_operands = 0 : i64, tpu.core_type = #tpu.core_type<tc>, window_params = [{transform_indices = @transform_0, window_bounds = array<i64: 8, 128>}, {transform_indices = @transform_1, window_bounds = array<i64: 128, 128>}, {pipeline_mode = #tpu.pipeline_mode<synchronous>, transform_indices = @transform_2, window_bounds = array<i64: 1, 128>}, {transform_indices = @transform_3, window_bounds = array<i64: 8, 128>}]} {
    %c0_i32 = arith.constant 0 : i32
    %0 = arith.cmpi eq, %arg1, %c0_i32 : i32
    %1 = arith.extui %0 : i1 to i32
    %c0_i32_0 = arith.constant 0 : i32
    %2 = arith.cmpi ne, %1, %c0_i32_0 : i32
    scf.if %2 {
      %cst_10 = arith.constant 0.000000e+00 : f32
      %13 = vector.broadcast %cst_10 : f32 to vector<8x128xf32>
      %c0_11 = arith.constant 0 : index
      %c0_12 = arith.constant 0 : index
      %14 = vector.load %arg5[%c0_11, %c0_12] : memref<8x128xf32, #tpu.memory_space<vmem>>, vector<8x128xf32>
      tpu.vector_store %arg5[%c0_11, %c0_12], %13 {strides = array<i32>} : memref<8x128xf32, #tpu.memory_space<vmem>>, vector<8x128xf32>,
    } else {
    }
    %c0 = arith.constant 0 : index
    %c0_1 = arith.constant 0 : index
    %3 = vector.load %arg3[%c0, %c0_1] : memref<128x128xbf16, #tpu.memory_space<vmem>>, vector<128x128xbf16>
    %c0_2 = arith.constant 0 : index
    %c0_3 = arith.constant 0 : index
    %4 = vector.load %arg2[%c0_2, %c0_3] : memref<8x128xf32, #tpu.memory_space<vmem>>, vector<8x128xf32>
    %5 = arith.truncf %4 : vector<8x128xf32> to vector<8x128xbf16>
    %c0_4 = arith.constant 0 : index
    %c0_5 = arith.constant 0 : index
    %6 = vector.load %arg5[%c0_4, %c0_5] : memref<8x128xf32, #tpu.memory_space<vmem>>, vector<8x128xf32>
    %cst = arith.constant dense<0.000000e+00> : vector<8x128xf32>
    %7 = tpu.matmul %5, %3, %cst {dimension_numbers = #tpu.dot_dimension_numbers<[1], [1], [0], [0], [0, 0, 1, 0], [], []>} : vector<8x128xbf16>, vector<128x128xbf16>, vector<8x128xf32> -> vector<8x128xf32>
    %8 = arith.addf %6, %7 : vector<8x128xf32>
    %c0_6 = arith.constant 0 : index
    %c0_7 = arith.constant 0 : index
    %9 = vector.load %arg5[%c0_6, %c0_7] : memref<8x128xf32, #tpu.memory_space<vmem>>, vector<8x128xf32>
    tpu.vector_store %arg5[%c0_6, %c0_7], %8 {strides = array<i32>} : memref<8x128xf32, #tpu.memory_space<vmem>>, vector<8x128xf32>,
    %c0_i32_8 = arith.constant 0 : i32
    %10 = arith.cmpi eq, %arg1, %c0_i32_8 : i32
    %11 = arith.extui %10 : i1 to i32
    %c0_i32_9 = arith.constant 0 : i32
    %12 = arith.cmpi ne, %11, %c0_i32_9 : i32
    scf.if %12 {
      %c0_10 = arith.constant 0 : index
      %c0_11 = arith.constant 0 : index
      %13 = vector.load %arg5[%c0_10, %c0_11] : memref<8x128xf32, #tpu.memory_space<vmem>>, vector<8x128xf32>
      %c0_12 = arith.constant 0 : index
      %c0_13 = arith.constant 0 : index
      %14 = vector.load %arg4[%c0_12, %c0_13] : memref<1x128xf32, #tpu.memory_space<vmem>>, vector<1x128xf32>
      %15 = vector.broadcast %14 : vector<1x128xf32> to vector<8x128xf32>
      %16 = arith.addf %13, %15 : vector<8x128xf32>
      %cst_14 = arith.constant dense<0xFF800000> : vector<8xf32>
      %17 = vector.multi_reduction <maximumf>, %16, %cst_14 [1] : vector<8x128xf32> to vector<8xf32>
      %18 = vector.shape_cast %17 : vector<8xf32> to vector<8x1xf32>
      %19 = vector.broadcast %18 : vector<8x1xf32> to vector<8x128xf32>
      %20 = arith.subf %16, %19 : vector<8x128xf32>
      %21 = math.exp %20 : vector<8x128xf32>
      %cst_15 = arith.constant dense<0.000000e+00> : vector<8xf32>
      %22 = vector.multi_reduction <add>, %21, %cst_15 [1] : vector<8x128xf32> to vector<8xf32>
      %23 = vector.shape_cast %22 : vector<8xf32> to vector<8x1xf32>
      %24 = math.log %23 : vector<8x1xf32>
      %25 = vector.broadcast %24 : vector<8x1xf32> to vector<8x128xf32>
      %26 = arith.subf %20, %25 : vector<8x128xf32>
      %c0_16 = arith.constant 0 : index
      %c0_17 = arith.constant 0 : index
      %27 = vector.load %arg5[%c0_16, %c0_17] : memref<8x128xf32, #tpu.memory_space<vmem>>, vector<8x128xf32>
      tpu.vector_store %arg5[%c0_16, %c0_17], %26 {strides = array<i32>} : memref<8x128xf32, #tpu.memory_space<vmem>>, vector<8x128xf32>,
    } else {
    }
    return
  }
  func.func @transform_0(%arg0: i32, %arg1: i32) -> (i32, i32) {
    %c0_i32 = arith.constant 0 : i32
    return %arg0, %arg1 : i32, i32
  }
  func.func @transform_1(%arg0: i32, %arg1: i32) -> (i32, i32) {
    %c0_i32 = arith.constant 0 : i32
    %c0_i32_0 = arith.constant 0 : i32
    return %c0_i32, %arg1 : i32, i32
  }
  func.func @transform_2(%arg0: i32, %arg1: i32) -> (i32, i32) {
    %c0_i32 = arith.constant 0 : i32
    %c0_i32_0 = arith.constant 0 : i32
    %c0_i32_1 = arith.constant 0 : i32
    return %c0_i32, %c0_i32_0 : i32, i32
  }
  func.func @transform_3(%arg0: i32, %arg1: i32) -> (i32, i32) {
    %c0_i32 = arith.constant 0 : i32
    %c0_i32_0 = arith.constant 0 : i32
    return %arg0, %c0_i32 : i32, i32
  }
}

</mosaic_0001>

<bundles_post_ra>
// kernel: bow_forward_prepared.1
= control target key start
LH: loop header
LB: loop body
LE: loop exit
PB: predicated region body
PF: predicated region fallthrough
CT: control target
= control target key end

     0   :  { %8 = vsyncpa [#allocation3], 0  ;;  %s217_s15 = smov [#allocation2]   ;;  %s218_s17 = smov 64   ;;  %s252_s0 = inlined_call_operand.vmem [shape: f32[8,128], index: 0, kind: input, shape index: {}]   ;;  %s253_s1 = inlined_call_operand.hbm [shape: bf16[128,128], index: 1, kind: input, shape index: {}]   ;;  %s254_s2 = inlined_call_operand.vmem [shape: f32[1,128], index: 2, kind: input, shape index: {}]   ;;  %s255_s3 = inlined_call_operand.vmem [shape: f32[8,128], index: 3, kind: output, shape index: {}]  }
   0x1   :  { %s15_s14 = sshll.u32 %s253_s1, 4  ;;  %s17_s16 = sshll.u32 %s217_s15, 4  ;;  %s16_s14 = int_to_ptr.hbm [resolvable:$true] %s15_s14  ;;  %s18_s16 = int_to_ptr.vmem [resolvable:$true] %s17_s16 }
   0x2   :  { %s219_s18 = smov 4  }
   0x3   :  { %23 = dma.hbm_to_vmem [thread:$0]  %s16_s14, 1024, %s18_s16, [#allocation3], %s218_s17, %s218_s17, %s219_s18  }
   0x4   :  { %215 = dma.done.wait [#allocation3], 1024  }
   0x5   :  { %216 = vsyncadd [#allocation3], 4294966272  ;;  %v181_v0 = vld [vmem:[#allocation2 + $0x38] sm:$0xff]  ;;  %v180_v1 = vld [vmem:[#allocation2 + $0x30] sm:$0xff] }
   0x6   :  { %102 = vmatpush.bf16.xpose.msra.mxu0 %v181_v0  ;;  %v179_v2 = vld [vmem:[#allocation2 + $0x28] sm:$0xff]  ;;  %v178_v3 = vld [vmem:[#allocation2 + $0x20] sm:$0xff]  ;;  %v177_v4 = vld [vmem:[#allocation2 + $0x18] sm:$0xff] }
   0x7   :  { %v176_v5 = vld [vmem:[#allocation2 + $0x10] sm:$0xff]  ;;  %v175_v6 = vld [vmem:[#allocation2 + $0x8] sm:$0xff]  ;;  %v174_v7 = vld [vmem:[#allocation2] sm:$0xff] }
   0x8   :  { %v51_v8 = vld [vmem:[%s252_s0] sm:$0xff] }
   0x9   :  { %v52_v9 = vpack.c.bf16 %v51_v8, %v51_v8  ;;  %v186_v10 = vld [vmem:[%s254_s2] ss:$0 sm:$0xff] }
   0xe   :  { %103 = vmatpush.bf16.xpose.msra.mxu0 %v180_v1 }
  0x16   :  { %104 = vmatpush.bf16.xpose.msra.mxu0 %v179_v2 }
  0x1e   :  { %105 = vmatpush.bf16.xpose.msra.mxu0 %v178_v3 }
  0x26   :  { %106 = vmatpush.bf16.xpose.msra.mxu0 %v177_v4 }
  0x2e   :  { %107 = vmatpush.bf16.xpose.msra.mxu0 %v176_v5 }
  0x36   :  { %108 = vmatpush.bf16.xpose.msra.mxu0 %v175_v6 }
  0x3e   :  { %109 = vmatpush.bf16.xpose.msra.mxu0 %v174_v7 }
  0x45   :  { %110 = vmatmul.bf16.vlgmr.msra.gmra.mxu0 %v52_v9 }
  0xc2   :  { %v111_v11 = vpop.f32.mrf.mxu0 }
  0xc3   :  { %v125_v12 = vadd.f32 %v186_v10, %v111_v11 }
  0xc5   :  { %126 = vmax.xlane.f32.xlu0 %v125_v12 }
  0xca   :  { %v113_v13 = vpop.f32.mrf.mxu0 }
 0x138   :  { %v127_v14 = vpop.xlane.xlu0 %126 }
 0x139   :  { %v128_v15 = vsub.f32 %v125_v12, %v127_v14 }
 0x13b   :  { %v129_v16 = vmul.f32 1.442695, %v128_v15 }
 0x13d   :  { %187 = vpow2.f32 %v129_v16 }
 0x143   :  { %v188_v17 = vpop.eup %187 }
 0x144   :  { %131 = vadd.xlane.f32.xlu0 %v188_v17 }
 0x1b7   :  { %v132_v18 = vpop.xlane.xlu0 %131 }
 0x1b8   :  { %189 = vlog2.f32 %v132_v18 }
 0x1be   :  { %v190_v19 = vpop.eup %189 }
 0x1bf   :  { %v134_v20 = vmul.f32 0.6931472, %v190_v19 }
 0x1c1   :  { %v135_v21 = vsub.f32 %v128_v15, %v134_v20 }
 0x1c3   :  { %136 = vst [vmem:[%s255_s3] sm:$0xff] %v135_v21 }
 0x1c4   :  { %141 = vsyncpa [#allocation3], 1 }

</bundles_post_ra>
